<compile_context>
chip_gen: v6e
topology: v6e:2x2x1
jax: 0.10.0
libtpu: 0.0.40
codegen_flags: <defaults>
</compile_context>

<pallas_src>
import functools

import jax
import jax.numpy as jnp
from jax import lax
from jax.experimental import pallas as pl
from jax.experimental.pallas import tpu as pltpu


def _round_up(x, m):
    return (x + m - 1) // m * m


def _cdiv(a, b):
    return -(-a // b)


def _conv2x2_kernel(x_ref, h_ref, w_ref, b_ref, o_ref, win_ref, *, width, tile_m):
    """2x2 VALID conv on one (image, row-tile) block, NCHW-native orientation.

    x_ref:   (1, Cin, TILE_M)   main activation tile (channels=sublanes, flat spatial=lanes)
    h_ref:   (1, Cin, HB)       halo = the HB flat elements that follow this tile
    w_ref:   (4, Cout, Cin)     per-tap weights, tap order (kh,kw)=(0,0),(0,1),(1,0),(1,1)
    b_ref:   (Cout, 1)          bias (f32)
    o_ref:   (1, Cout, TILE_M)  output tile (lane-dense, single dense store)
    win_ref: (Cin, TILE_M+HB)   VMEM scratch holding the contiguous input window
    """
    # Assemble the contiguous window once (two aligned dense stores), then slice the
    # Ref per tap -- no full-slab value slicing, no sublane-crossing per-row loops.
    win_ref[:, :tile_m] = x_ref[0]
    win_ref[:, tile_m:] = h_ref[0]

    acc = jnp.dot(w_ref[0], win_ref[:, 0:tile_m], preferred_element_type=jnp.float32)
    for tap, off in ((1, 1), (2, width), (3, width + 1)):
        acc = acc + jnp.dot(w_ref[tap], win_ref[:, off:off + tile_m],
                            preferred_element_type=jnp.float32)

    # Bias add in f32 (lane-broadcast), one dense slab store for the whole block.
    o_ref[0] = (acc + b_ref[...]).astype(o_ref.dtype)


def down_forward(x_nchw, w_oihw, bias, *, compute_dtype=None, tile_m_target=1024):
    """Forward pass matching torch.nn.Conv2d(inc, outc, kernel_size=2) on NCHW input.

    compute_dtype: optionally cast activations/weights (e.g. jnp.bfloat16) to halve HBM
    read traffic on bandwidth-bound chips; accumulation stays f32, output keeps input dtype.
    """
    N, Cin, H, W = x_nchw.shape
    Cout = w_oihw.shape[0]
    assert H >= 2 and W >= 2, "kernel_size=2 VALID conv needs H, W >= 2"
    Ho, Wo = H - 1, W - 1
    M = Ho * W                                  # flattened output length (padded width W)

    out_dtype = x_nchw.dtype
    in_dtype = jnp.dtype(compute_dtype) if compute_dtype is not None else jnp.dtype(x_nchw.dtype)
    isz = in_dtype.itemsize
    osz = jnp.dtype(out_dtype).itemsize

    # ---- tiling along the flattened spatial (lane) axis ---------------------
    HB = _round_up(W + 1, 128)                  # halo chunk (covers taps +1, +W, +W+1)
    TILE_M = min(tile_m_target, _round_up(M, 128))
    TILE_M = _round_up(TILE_M, HB)              # keep halo-block index math exact

    def _vmem_bytes(tm):                        # double-buffered blocks + scratch window
        blk = (Cin * tm * isz + Cin * HB * isz + 4 * Cout * Cin * isz
               + Cout * 4 + Cout * tm * osz)
        return 2 * blk + Cin * (tm + HB) * isz

    VMEM_BUDGET = 48 * 1024 * 1024              # conservative across v5e/v6e/v7x (64 MiB)
    while TILE_M > HB and _vmem_bytes(TILE_M) > VMEM_BUDGET:
        TILE_M = max(HB, _round_up(TILE_M // 2, HB))

    num_m = _cdiv(M, TILE_M)
    M_out = num_m * TILE_M                      # padded output length
    L = M_out + HB                              # padded flattened input length (halo incl.)

    # ---- layout glue only (no transposes; one zero-pad copy of the input) ---
    x_flat = x_nchw.reshape(N, Cin, H * W)
    x_flat = jnp.pad(x_flat, ((0, 0), (0, 0), (0, L - H * W))).astype(in_dtype)
    w_taps = jnp.transpose(w_oihw, (2, 3, 0, 1)).reshape(4, Cout, Cin).astype(in_dtype)
    b2d = bias.reshape(Cout, 1).astype(jnp.float32)

    flops = 2 * N * M_out * 4 * Cin * Cout
    bytes_accessed = (N * Cin * L * isz                      # main activation reads
                      + N * num_m * Cin * HB * isz           # halo re-reads
                      + w_taps.size * isz + Cout * 4
                      + N * Cout * M_out * osz)              # output writes

    kernel = functools.partial(_conv2x2_kernel, width=W, tile_m=TILE_M)
    vmem_limit = int(min(max(_vmem_bytes(TILE_M) + (8 << 20), 16 << 20), 100 << 20))

    out_flat = pl.pallas_call(
        kernel,
        out_shape=jax.ShapeDtypeStruct((N, Cout, M_out), out_dtype),
        grid_spec=pltpu.PrefetchScalarGridSpec(
            num_scalar_prefetch=0,
            grid=(N, num_m),
            in_specs=[
                # main tile
                pl.BlockSpec((1, Cin, TILE_M), lambda n, m: (n, 0, m)),
                # (W+1)-halo: the next HB-sized chunk of the SAME array
                pl.BlockSpec((1, Cin, HB),
                             lambda n, m: (n, 0, (m + 1) * (TILE_M // HB))),
                pl.BlockSpec((4, Cout, Cin), lambda n, m: (0, 0, 0)),
                pl.BlockSpec((Cout, 1), lambda n, m: (0, 0)),
            ],
            out_specs=pl.BlockSpec((1, Cout, TILE_M), lambda n, m: (n, 0, m)),
            scratch_shapes=[pltpu.VMEM((Cin, TILE_M + HB), in_dtype)],
        ),
        compiler_params=pltpu.CompilerParams(
            dimension_semantics=("parallel", "parallel"),
            vmem_limit_bytes=vmem_limit,
        ),
        cost_estimate=pl.CostEstimate(
            flops=flops, transcendentals=0, bytes_accessed=bytes_accessed),
    )(x_flat, x_flat, w_taps, b2d)

    # (N, Cout, M_out) -> drop pad -> (N, Cout, Ho, W) -> drop wrapped last column.
    out = out_flat[:, :, :M].reshape(N, Cout, Ho, W)[:, :, :, :Wo]
    return out


def init_down_params(key, inc, outc):
    """Deterministic init mirroring nn.Conv2d default (uniform(-k, k), k=1/sqrt(fan_in))."""
    kw, kb = jax.random.split(key)
    fan_in = inc * 2 * 2
    bound = 1.0 / jnp.sqrt(jnp.float32(fan_in))
    weight = jax.random.uniform(kw, (outc, inc, 2, 2), jnp.float32, -bound, bound)
    bias = jax.random.uniform(kb, (outc,), jnp.float32, -bound, bound)
    return weight, bias


if __name__ == "__main__":
    key = jax.random.PRNGKey(0)
    k_x, k_p = jax.random.split(key)

    N, Cin, Cout, H, W = 2, 4, 8, 16, 16
    x = jax.random.normal(k_x, (N, Cin, H, W), jnp.float32)
    weight, bias = init_down_params(k_p, Cin, Cout)

    def conv_ref(xv, wv, bv):
        y = lax.conv_general_dilated(
            xv, wv, window_strides=(1, 1), padding="VALID",
            dimension_numbers=("NCHW", "OIHW", "NCHW"),
            precision=lax.Precision.HIGHEST)
        return y + bv[None, :, None, None]

    # f32 path (matches the torch module's semantics).
    y = jax.block_until_ready(down_forward(x, weight, bias))
    y_ref = conv_ref(x, weight, bias)
    assert y.shape == (N, Cout, H - 1, W - 1), y.shape
    assert jnp.allclose(y, y_ref, atol=1e-4, rtol=1e-5), \
        float(jnp.max(jnp.abs(y - y_ref)))

    # bf16 I/O path (HBM-bandwidth optimization for v5e/v6e); accumulation stays f32.
    y_bf16 = jax.block_until_ready(
        down_forward(x, weight, bias, compute_dtype=jnp.bfloat16))
    x_r = x.astype(jnp.bfloat16).astype(jnp.float32)
    w_r = weight.astype(jnp.bfloat16).astype(jnp.float32)
    y_bf16_ref = conv_ref(x_r, w_r, bias)
    assert jnp.allclose(y_bf16, y_bf16_ref, atol=1e-3, rtol=1e-3), \
        float(jnp.max(jnp.abs(y_bf16 - y_bf16_ref)))

    print("KERNEL_OK")
</pallas_src>

<mosaic_0001>
module attributes {stable_mosaic.version = 11 : i64} {
  func.func @_conv2x2_kernel(%arg0: i32, %arg1: i32, %arg2: memref<1x4x256xf32, #tpu.memory_space<vmem>>, %arg3: memref<1x4x128xf32, #tpu.memory_space<vmem>>, %arg4: memref<4x8x4xf32, #tpu.memory_space<vmem>>, %arg5: memref<8x1xf32, #tpu.memory_space<vmem>>, %arg6: memref<1x8x256xf32, #tpu.memory_space<vmem>>, %arg7: memref<4x384xf32, #tpu.memory_space<vmem>>) attributes {dimension_semantics = [#tpu.dimension_semantics<parallel>, #tpu.dimension_semantics<parallel>], iteration_bounds = array<i64: 2, 1>, scalar_prefetch = 0 : i64, scratch_operands = 1 : i64, tpu.core_type = #tpu.core_type<tc>, window_params = [{transform_indices = @transform_0, window_bounds = array<i64: 1, 4, 256>}, {transform_indices = @transform_1, window_bounds = array<i64: 1, 4, 128>}, {pipeline_mode = #tpu.pipeline_mode<synchronous>, transform_indices = @transform_2, window_bounds = array<i64: 4, 8, 4>}, {pipeline_mode = #tpu.pipeline_mode<synchronous>, transform_indices = @transform_3, window_bounds = array<i64: 8, 1>}, {transform_indices = @transform_4, window_bounds = array<i64: 1, 8, 256>}]} {
    %c0 = arith.constant 0 : index
    %c0_0 = arith.constant 0 : index
    %c0_1 = arith.constant 0 : index
    %0 = vector.load %arg2[%c0, %c0_0, %c0_1] : memref<1x4x256xf32, #tpu.memory_space<vmem>>, vector<1x4x256xf32>
    %1 = vector.shape_cast %0 : vector<1x4x256xf32> to vector<4x256xf32>
    %c0_2 = arith.constant 0 : index
    %c0_3 = arith.constant 0 : index
    %2 = vector.load %arg7[%c0_2, %c0_3] : memref<4x384xf32, #tpu.memory_space<vmem>>, vector<4x256xf32>
    tpu.vector_store %arg7[%c0_2, %c0_3], %1 {strides = array<i32>} : memref<4x384xf32, #tpu.memory_space<vmem>>, vector<4x256xf32>,
    %c0_4 = arith.constant 0 : index
    %c0_5 = arith.constant 0 : index
    %c0_6 = arith.constant 0 : index
    %3 = vector.load %arg3[%c0_4, %c0_5, %c0_6] : memref<1x4x128xf32, #tpu.memory_space<vmem>>, vector<1x4x128xf32>
    %4 = vector.shape_cast %3 : vector<1x4x128xf32> to vector<4x128xf32>
    %c0_7 = arith.constant 0 : index
    %c256 = arith.constant 256 : index
    %5 = vector.load %arg7[%c0_7, %c256] : memref<4x384xf32, #tpu.memory_space<vmem>>, vector<4x128xf32>
    tpu.vector_store %arg7[%c0_7, %c256], %4 {strides = array<i32>} : memref<4x384xf32, #tpu.memory_space<vmem>>, vector<4x128xf32>,
    %c0_8 = arith.constant 0 : index
    %c0_9 = arith.constant 0 : index
    %c0_10 = arith.constant 0 : index
    %6 = vector.load %arg4[%c0_8, %c0_9, %c0_10] : memref<4x8x4xf32, #tpu.memory_space<vmem>>, vector<1x8x4xf32>
    %7 = vector.shape_cast %6 : vector<1x8x4xf32> to vector<8x4xf32>
    %c0_11 = arith.constant 0 : index
    %c0_12 = arith.constant 0 : index
    %8 = vector.load %arg7[%c0_11, %c0_12] : memref<4x384xf32, #tpu.memory_space<vmem>>, vector<4x256xf32>
    %cst = arith.constant dense<0.000000e+00> : vector<8x256xf32>
    %9 = tpu.matmul %7, %8, %cst {dimension_numbers = #tpu.dot_dimension_numbers<[1], [0], [0], [1], [0, 0, 1, 1], [], []>} : vector<8x4xf32>, vector<4x256xf32>, vector<8x256xf32> -> vector<8x256xf32>
    %c1 = arith.constant 1 : index
    %c0_13 = arith.constant 0 : index
    %c0_14 = arith.constant 0 : index
    %10 = vector.load %arg4[%c1, %c0_13, %c0_14] : memref<4x8x4xf32, #tpu.memory_space<vmem>>, vector<1x8x4xf32>
    %11 = vector.shape_cast %10 : vector<1x8x4xf32> to vector<8x4xf32>
    %c0_15 = arith.constant 0 : index
    %c1_16 = arith.constant 1 : index
    %12 = vector.load %arg7[%c0_15, %c1_16] : memref<4x384xf32, #tpu.memory_space<vmem>>, vector<4x256xf32>
    %cst_17 = arith.constant dense<0.000000e+00> : vector<8x256xf32>
    %13 = tpu.matmul %11, %12, %cst_17 {dimension_numbers = #tpu.dot_dimension_numbers<[1], [0], [0], [1], [0, 0, 1, 1], [], []>} : vector<8x4xf32>, vector<4x256xf32>, vector<8x256xf32> -> vector<8x256xf32>
    %14 = arith.addf %9, %13 : vector<8x256xf32>
    %c2 = arith.constant 2 : index
    %c0_18 = arith.constant 0 : index
    %c0_19 = arith.constant 0 : index
    %15 = vector.load %arg4[%c2, %c0_18, %c0_19] : memref<4x8x4xf32, #tpu.memory_space<vmem>>, vector<1x8x4xf32>
    %16 = vector.shape_cast %15 : vector<1x8x4xf32> to vector<8x4xf32>
    %c0_20 = arith.constant 0 : index
    %c16 = arith.constant 16 : index
    %17 = vector.load %arg7[%c0_20, %c16] : memref<4x384xf32, #tpu.memory_space<vmem>>, vector<4x256xf32>
    %cst_21 = arith.constant dense<0.000000e+00> : vector<8x256xf32>
    %18 = tpu.matmul %16, %17, %cst_21 {dimension_numbers = #tpu.dot_dimension_numbers<[1], [0], [0], [1], [0, 0, 1, 1], [], []>} : vector<8x4xf32>, vector<4x256xf32>, vector<8x256xf32> -> vector<8x256xf32>
    %19 = arith.addf %14, %18 : vector<8x256xf32>
    %c3 = arith.constant 3 : index
    %c0_22 = arith.constant 0 : index
    %c0_23 = arith.constant 0 : index
    %20 = vector.load %arg4[%c3, %c0_22, %c0_23] : memref<4x8x4xf32, #tpu.memory_space<vmem>>, vector<1x8x4xf32>
    %21 = vector.shape_cast %20 : vector<1x8x4xf32> to vector<8x4xf32>
    %c0_24 = arith.constant 0 : index
    %c17 = arith.constant 17 : index
    %22 = vector.load %arg7[%c0_24, %c17] : memref<4x384xf32, #tpu.memory_space<vmem>>, vector<4x256xf32>
    %cst_25 = arith.constant dense<0.000000e+00> : vector<8x256xf32>
    %23 = tpu.matmul %21, %22, %cst_25 {dimension_numbers = #tpu.dot_dimension_numbers<[1], [0], [0], [1], [0, 0, 1, 1], [], []>} : vector<8x4xf32>, vector<4x256xf32>, vector<8x256xf32> -> vector<8x256xf32>
    %24 = arith.addf %19, %23 : vector<8x256xf32>
    %c0_26 = arith.constant 0 : index
    %c0_27 = arith.constant 0 : index
    %25 = vector.load %arg5[%c0_26, %c0_27] : memref<8x1xf32, #tpu.memory_space<vmem>>, vector<8x1xf32>
    %26 = vector.broadcast %25 : vector<8x1xf32> to vector<8x256xf32>
    %27 = arith.addf %24, %26 : vector<8x256xf32>
    %c0_28 = arith.constant 0 : index
    %c0_29 = arith.constant 0 : index
    %c0_30 = arith.constant 0 : index
    %28 = vector.load %arg6[%c0_28, %c0_29, %c0_30] : memref<1x8x256xf32, #tpu.memory_space<vmem>>, vector<1x8x256xf32>
    %29 = vector.shape_cast %28 : vector<1x8x256xf32> to vector<8x256xf32>
    %30 = vector.shape_cast %27 : vector<8x256xf32> to vector<1x8x256xf32>
    tpu.vector_store %arg6[%c0_28, %c0_29, %c0_30], %30 {strides = array<i32>} : memref<1x8x256xf32, #tpu.memory_space<vmem>>, vector<1x8x256xf32>,
    return
  }
  func.func @transform_0(%arg0: i32, %arg1: i32) -> (i32, i32, i32) {
    %c0_i32 = arith.constant 0 : i32
    %c0_i32_0 = arith.constant 0 : i32
    return %arg0, %c0_i32, %arg1 : i32, i32, i32
  }
  func.func @transform_1(%arg0: i32, %arg1: i32) -> (i32, i32, i32) {
    %c1_i32 = arith.constant 1 : i32
    %0 = arith.addi %arg1, %c1_i32 : i32
    %c2_i32 = arith.constant 2 : i32
    %1 = arith.muli %0, %c2_i32 : i32
    %c0_i32 = arith.constant 0 : i32
    %c0_i32_0 = arith.constant 0 : i32
    return %arg0, %c0_i32, %1 : i32, i32, i32
  }
  func.func @transform_2(%arg0: i32, %arg1: i32) -> (i32, i32, i32) {
    %c0_i32 = arith.constant 0 : i32
    %c0_i32_0 = arith.constant 0 : i32
    %c0_i32_1 = arith.constant 0 : i32
    %c0_i32_2 = arith.constant 0 : i32
    return %c0_i32, %c0_i32_0, %c0_i32_1 : i32, i32, i32
  }
  func.func @transform_3(%arg0: i32, %arg1: i32) -> (i32, i32) {
    %c0_i32 = arith.constant 0 : i32
    %c0_i32_0 = arith.constant 0 : i32
    %c0_i32_1 = arith.constant 0 : i32
    return %c0_i32, %c0_i32_0 : i32, i32
  }
  func.func @transform_4(%arg0: i32, %arg1: i32) -> (i32, i32, i32) {
    %c0_i32 = arith.constant 0 : i32
    %c0_i32_0 = arith.constant 0 : i32
    return %arg0, %c0_i32, %arg1 : i32, i32, i32
  }
}

</mosaic_0001>

<bundles_post_ra>
// kernel: tpu_custom_call.1
= control target key start
LH: loop header
LB: loop body
LE: loop exit
PB: predicated region body
PF: predicated region fallthrough
CT: control target
= control target key end

     0   :  { %9 = vsyncpa [#allocation4], 0  ;;  %s1122_s0 = inlined_call_operand.vmem [shape: f32[2,4,384], index: 0, kind: input, shape index: {}]   ;;  %s1123_s1 = inlined_call_operand.vmem [shape: f32[2,4,384], index: 1, kind: input, shape index: {}]   ;;  %s1124_s2 = inlined_call_operand.vmem [shape: f32[4,8,4], index: 2, kind: input, shape index: {}]   ;;  %s1125_s3 = inlined_call_operand.vmem [shape: f32[8,1], index: 3, kind: input, shape index: {}]   ;;  %s1126_s4 = inlined_call_operand.hbm [shape: f32[2,8,256], index: 4, kind: output, shape index: {}]  }
   0x1   :  { %11 = vsyncpa [#allocation4 + $0x1], 0  ;;  %s993_s15 = smov 0   ;;  %s995_s16 = smov 0  }
   0x2   :  { %s997_s17 = smov 0   ;;  %s999_s18 = smov 0  }
   0x3   :  { %s1001_s19 = smov 0   ;;  %s1003_s20 = smov 0  }
   0x4 LB: > { %s787_s21 = sadd.s32 4294967295, %s960_s20   ;;  %s788_s22 = sadd.s32 4294967294, %s960_s20   ;;  %s960_s20 = sphi %s1003_s20, %s17_s20   ;;  %s956_s19 = sphi %s1001_s19, %s1133_s19   ;;  %s952_s18 = sphi %s999_s18, %s1132_s18   ;;  %s948_s17 = sphi %s997_s17, %s1131_s17   ;;  %s944_s16 = sphi %s995_s16, %s1130_s16   ;;  %s940_s15 = sphi %s993_s15, %s1129_s15  }
   0x5   : > { %s29_s23 = sadd.s32 1, %s956_s19  ;;  %s140_s24 = sadd.s32 1, %s948_s17 }
   0x6   : > { %p31_p0 = scmp.ge.s32.totalorder %s29_s23, 2  ;;  %p150_p1 = scmp.ne.s32.totalorder %s948_s17, %s944_s16 }
   0x7   : > { %p151_p2 = scmp.eq.s32.totalorder %s787_s21, 1  ;;  %p156_p3 = scmp.ne.s32.totalorder %s944_s16, %s940_s15 }
   0x8   : > { %s1135_s23 = smov (%p31_p0, %s29_s23), 0  ;;  %p157_p5 = scmp.eq.s32.totalorder %s788_s22, 1 }
   0x9   : > { %p1033_p4 = por %p151_p2, %p150_p1  ;;  %s135_s26 = ssub.s32 %s956_s19, %s1135_s23 }
   0xa   : > { %p791_p6 = scmp.ge.s32.totalorder %s960_s20, 1  ;;  %p138_p7 = scmp.eq.s32.totalorder %s135_s26, 0 }
   0xb   : > { %p1040_p8 = por %p157_p5, %p156_p3  ;;  %p217_p9 = scmp.lt.s32.totalorder %s960_s20, 3 }
   0xc   : > { %s1046_s28 = scalar_select %p138_p7, %s948_s17, %s140_s24  }
   0xd   : > { %p218_p10 = pnand %p791_p6, %p217_p9 }
   0xe   : > { %p266_p11 = scmp.lt.s32.totalorder (!%p218_p10), %s952_s18, 1  ;;  %s962_s12 = smov (!%p218_p10), 127  }
   0xf   : > { %221 = sbr.rel (%p218_p10) target bundleno = 380 (0x17c), region = 36  ;;  %s963_s13 = smov (!%p218_p10), 112  }
  0x10   : > { %s965_s22 = smov (!%p218_p10), 111   ;;  %s258_s9 = sand.u32 (!%p218_p10), 1, %s944_s16  }
  0x11   : > { %s792_s10 = sshll.u32 (!%p218_p10), %s258_s9, 4  ;;  %s677_s24 = scalar_lea.sflag (!%p218_p10), [#allocation4], %s258_s9 }
  0x14   : > { %s267_s29 = scalar_select %p266_p11, %s952_s18, 1  ;;  %vm318_vm0 = vcmask 1043456   ;;  %v964_v3 = vmov 0.0   ;;  %vm314_vm1 = vcmask 31744   ;;  %v296_v4 = vld [vmem:[%s1124_s2] sm:$0xff]  ;;  %v966_v9 = vmov 0  }
  0x15   : > { %387 = vmatprep.mubr.f32.mxu0 %v964_v3  ;;  %467 = vmatprep.mubr.f32.mxu1 %v964_v3  ;;  %v666_v8 = vld [vmem:[%s1125_s3] sm:$0xff]  ;;  %vm311_vm2 = vcmask 1039360   ;;  %vm487_vm3 = vcmask 916480   ;;  %v795_v18 = vld [vmem:[%s1124_s2 + $0x8] sm:$0xff]  ;;  %vm583_vm4 = vcmask 908288   ;;  %v802_v24 = vld [vmem:[%s1124_s2 + $0x10] sm:$0xff] }
  0x16   : > { %s818_s30 = smul.u32 12, %s267_s29  ;;  %881 = vset.pattern.permute.xlu1 %v966_v9  ;;  %882 = vset.pattern.permute.xlu0 %v966_v9  ;;  %v806_v26 = vld [vmem:[%s1124_s2 + $0x18] sm:$0xff]  ;;  %s967_s29 = smov [#allocation3]  }
  0x18   : > { %s273_s7 = scalar_lea.vmem %s1122_s0, %s818_s30  ;;  %s816_s8 = sadd.s32 8, %s818_s30 }
  0x19   : > { %v292_v0 = vld [vmem:[%s273_s7] sm:$0xff]  ;;  %s288_s11 = scalar_lea.vmem %s1123_s1, %s816_s8 }
  0x1a   : > { %305 = vrot.lane.b32.xlu1 %v292_v0, %s962_s12  ;;  %v294_v1 = vld [vmem:[%s288_s11] sm:$0xf]  ;;  %v304_v2 = vcombine.high %v292_v0, %v292_v0  ;;  %s817_s11 = sshll.u32 %s952_s18, 8  ;;  %s888_s18 = sshll.u32 %s967_s29, 4  ;;  %s889_s18 = int_to_ptr.vmem [resolvable:$false] %s888_s18 }
  0x1b   : > { %295 = vst [vmem:[#allocation2 + $0x8] sm:$0xf] %v294_v1  ;;  %s890_s30 = scalar_lea.vmem %s889_s18, 512 }
  0x1c   : > { %799 = vmatprep.subr.msk.mxu1 %vm318_vm0, %v304_v2 }
  0x1d   : > { %800 = vmatpush1.msk.msra.mxu1 %vm318_vm0, %v292_v0 }
  0x1e   : > { %481 = vrot.lane.b32.xlu1 %v292_v0, %s963_s13  ;;  %801 = vmatmul.mubr.msk.f32.vlgmr.msra.gmra.mxu1 %vm314_vm1, %v296_v4 }
  0x1f   : > { %657 = vmatprep.mubr.f32.mxu1 %v964_v3 }
  0x22   : > { %v301_v5 = vld [vmem:[#allocation2 + $0x8] sm:$0xf]  ;;  %483 = vrot.lane.b32.xlu1 %v304_v2, %s963_s13 }
  0x23   : > { %309 = vrot.lane.b32.xlu0 %v301_v5, %s962_s12  ;;  %v573_v6 = vld [vmem:[#allocation2 + $0x8] sm:$0xf] }
  0x24   : > { %v477_v7 = vld [vmem:[#allocation2 + $0x8] sm:$0xf] }
  0x26   : > { %581 = vrot.lane.b32.xlu1 %v573_v6, %s965_s22 }
  0x27   : > { %485 = vrot.lane.b32.xlu0 %v477_v7, %s963_s13 }
  0x2a   : > { %669 = vperm.xlu1 %881, %v666_v8  }
  0x2b   : > { %307 = vrot.lane.b32.xlu0 %v304_v2, %s962_s12  ;;  %s260_s12 = scalar_lea.vmem [#allocation3], %s792_s10 }
  0x2c   : > { %s693_s13 = sshll.u32 %s260_s12, 4  ;;  %s694_s13 = int_to_ptr.vmem [resolvable:$true] %s693_s13 }
  0x2d   : > { %s884_s26 = scalar_lea.vmem %s694_s13, 256  ;;  %p891_p1 = scmp.lt.s32.totalorder %s694_s13, %s889_s18 }
  0x2e   : > { %p885_p12 = scmp.ne.s32.totalorder %s694_s13, %s884_s26  ;;  %p892_p2 = scmp.lt.s32.totalorder %s890_s30, %s884_s26 }
  0x2f   : > { %579 = vrot.lane.b32.xlu0 %v304_v2, %s965_s22 }
  0x30   : > { %p886_p13 = pnand %p885_p12, %p1033_p4  ;;  %p893_p3 = por %p892_p2, %p891_p1 }
  0x32   : > { %p887_p0 = pneg %p886_p13 }
  0x33   : > { %577 = vrot.lane.b32.xlu0 %v292_v0, %s965_s22  ;;  %s691_s22 = scalar_lea.hbm %s1126_s4, %s817_s11 }
  0x34   : > { %p894_p5 = pnand %p893_p3, %p887_p0 }
  0x8c   : > { %v306_v10 = vpop.permute.xlu1 %305 }
  0x90   : > { %v482_v12 = vpop.permute.xlu1 %481 }
  0x94   : > { %v484_v14 = vpop.permute.xlu1 %483 }
  0x95   : > { %v310_v11 = vpop.permute.xlu0 %309  ;;  %v488_v21 = vsel %vm487_vm3, %v482_v12, %v484_v14 }
  0x98   : > { %v582_v19 = vpop.permute.xlu1 %581 }
  0x99   : > { %v486_v13 = vpop.permute.xlu0 %485 }
  0x9a   : > { %v489_v20 = vsel %vm487_vm3, %v484_v14, %v486_v13 }
  0x9d   : > { %v308_v15 = vpop.permute.xlu0 %307 }
  0x9e   : > { %v313_v16 = vsel %vm311_vm2, %v308_v15, %v310_v11  ;;  %v312_v17 = vsel %vm311_vm2, %v306_v10, %v308_v15 }
  0x9f   : > { %796 = vmatprep.subr.msk.mxu0 %vm318_vm0, %v313_v16 }
  0xa0   : > { %797 = vmatpush1.msk.msra.mxu0 %vm318_vm0, %v312_v17 }
  0xa1   : > { %798 = vmatmul.mubr.msk.f32.vlgmr.msra.gmra.mxu0 %vm314_vm1, %v795_v18  ;;  %803 = vmatprep.subr.msk.mxu0 %vm318_vm0, %v489_v20  ;;  %v580_v22 = vpop.permute.xlu0 %579 }
  0xa2   : > { %v585_v23 = vsel %vm583_vm4, %v580_v22, %v582_v19  ;;  %804 = vmatpush1.msk.msra.mxu0 %vm318_vm0, %v488_v21  ;;  %561 = vmatprep.mubr.f32.mxu0 %v964_v3 }
  0xa3   : > { %807 = vmatprep.subr.msk.mxu1 %vm318_vm0, %v585_v23 }
  0xa5   : > { %805 = vmatmul.mubr.msk.f32.vlgmr.msra.gmra.mxu0 %vm314_vm1, %v802_v24  ;;  %v578_v25 = vpop.permute.xlu0 %577  ;;  %v670_v39 = vpop.permute.xlu1 %669 }
  0xa6   : > { %v584_v27 = vsel %vm583_vm4, %v578_v25, %v580_v22 }
  0xa7   : > { %808 = vmatpush1.msk.msra.mxu1 %vm318_vm0, %v584_v27 }
  0xa8   : > { %809 = vmatmul.mubr.msk.f32.vlgmr.msra.gmra.mxu1 %vm314_vm1, %v806_v26 }
  0xde   : > { %v469_v28 = vpop.f32.mrf.mxu1 }
  0xe0   : > { %v471_v32 = vpop.f32.mrf.mxu1 }
 0x161   : > { %v389_v29 = vpop.f32.mrf.mxu0 }
 0x162   : > { %v470_v30 = vadd.f32 %v469_v28, %v389_v29 }
 0x163   : > { %v391_v31 = vpop.f32.mrf.mxu0 }
 0x164   : > { %v472_v34 = vadd.f32 %v471_v32, %v391_v31 }
 0x165   : > { %v563_v33 = vpop.f32.mrf.mxu0 }
 0x166   : > { %v568_v35 = vadd.f32 %v563_v33, %v470_v30 }
 0x167   : > { %v565_v36 = vpop.f32.mrf.mxu0 }
 0x168   : > { %v569_v37 = vadd.f32 %v565_v36, %v472_v34  ;;  %v659_v38 = vpop.f32.mrf.mxu1 }
 0x169   : > { %v664_v40 = vadd.f32 %v659_v38, %v568_v35 }
 0x16a   : > { %v661_v41 = vpop.f32.mrf.mxu1 }
 0x16b   : > { %v665_v42 = vadd.f32 %v661_v41, %v569_v37  ;;  %v672_v43 = vadd.f32 %v670_v39, %v664_v40 }
 0x16d   : > { %v673_v44 = vadd.f32 %v670_v39, %v665_v42  ;;  %674 = vst [vmem:[%s260_s12] sm:$0xff] %v672_v43 }
 0x16f   : > { %675 = vst [vmem:[%s260_s12 + $0x8] sm:$0xff] %v673_v44 }
 0x170   : > { %897 = shalt.err (!%p894_p5)
}
 0x171   : > { %s898_s5 = scalar_lea.hbm %s691_s22, 256  ;;  %s902_s8 = scalar_lea.hbm %s1126_s4, 512 }
 0x172   : > { %p899_p6 = scmp.ne.s32.totalorder %s691_s22, %s898_s5  ;;  %p903_p10 = scmp.lt.s32.totalorder %s691_s22, %s1126_s4 }
 0x173   : > { %p904_p11 = scmp.lt.s32.totalorder %s902_s8, %s898_s5 }
 0x174   : > { %p900_p7 = pnand %p899_p6, %p1033_p4 }
 0x175   : > { %p905_p12 = por %p904_p11, %p903_p10 }
 0x176   : > { %p901_p9 = pneg %p900_p7 }
 0x178   : > { %p906_p13 = pnand %p905_p12, %p901_p9 }
 0x17a   : > { %909 = shalt.err (!%p906_p13)
}
 0x17b   : > { %820 = dma.vmem_to_hbm [thread:$0]  (%p1033_p4), %s694_s13, 256, %s691_s22, %s677_s24  }
 0x17c PF: > { %p827_p0 = scmp.ge.s32.totalorder %s960_s20, 2  ;;  %s705_s11 = sand.u32 1, %s940_s15  }
 0x17d   : > { %s706_s12 = scalar_lea.sflag [#allocation4], %s705_s11 }
 0x17e   : > { %p823_p1 = pnand %p827_p0, %p1040_p8 }
 0x180   : > { %p824_p2 = pneg %p823_p1 }
 0x182   : > { %935 = dma.done.wait (%p824_p2), %s706_s12, 256  }
 0x183   : > { %937 = vsyncadd (%p824_p2), %s706_s12, 4294967040  ;;  %s17_s20 = sadd.s32 1, %s960_s20   ;;  %s1129_s15 = smov %s944_s16 }
 0x184   : > { %p14_p3 = scmp.ge.s32.totalorder %s17_s20, 4   ;;  %s1130_s16 = smov %s948_s17 }
 0x185   : > { %s1131_s17 = smov %s1046_s28  ;;  %s1132_s18 = smov %s956_s19 }
 0x186   : > { %s1133_s19 = smov %s1135_s23  ;;  %16 = sbr.rel (!%p14_p3) target bundleno = 4 (0x4), region = 77 }
 0x18b   :  { %711 = vsyncpa [#allocation4], 1 }
 0x18c   :  { %713 = vsyncpa [#allocation4 + $0x1], 1 }

</bundles_post_ra>
